<compile_context>
chip_gen: v6e
topology: v6e:2x2x1
jax: 0.10.0
libtpu: 0.0.40
codegen_flags: <defaults>
</compile_context>

<pallas_src>
import functools

import jax
import jax.numpy as jnp
from jax.experimental import pallas as pl
from jax.experimental.pallas import tpu as pltpu


def _cdiv(a, b):
    return -(-a // b)


def _round_up(x, m):
    return _cdiv(x, m) * m


def _vmem_limit_bytes():
    """Scoped VMEM limit ~= half of physical VMEM (64 MiB on v5e/v6e, 32 MiB on v7x)."""
    default_physical = 64 * 1024 * 1024  # most conservative (v7x per-TC)
    try:
        info = pltpu.get_tpu_info()
        physical = int(getattr(info, "vmem_capacity_bytes", 0) or default_physical)
    except Exception:  # not on TPU / query unavailable
        physical = default_physical
    return max(32 * 1024 * 1024, min(physical // 2, 96 * 1024 * 1024))


def _ce_tile_kernel(logits_ref, target_ref, nll_ref, *, total_rows, tile_rows):
    # logits_ref: VMEM (TB, C) input dtype; target_ref: VMEM (TB, 1) int32;
    # nll_ref: VMEM (TB, 1) f32 per-sample NLL.
    raw = logits_ref[...]                                  # (TB, C), input dtype
    tb, c = raw.shape

    # Numerically-stable logsumexp: row max is exact in the input dtype; exp/sum in f32.
    row_max = jnp.max(raw, axis=-1, keepdims=True).astype(jnp.float32)      # (TB, 1)
    sum_exp = jnp.sum(jnp.exp(raw.astype(jnp.float32) - row_max),
                      axis=-1, keepdims=True)                               # (TB, 1)
    # TODO(synk): if a v7x bundle dump shows the EUP exp slot saturated with bf16
    # inputs, a bf16 exp with f32 accumulation is the next lever (needs tol check).

    # Gather the target logit from the RAW tile (compare/select = VPU, row sum = XLU),
    # so the shifted/exp f32 temporary above stays single-use and can stream.
    col_ids = jax.lax.broadcasted_iota(jnp.int32, (tb, c), 1)
    tgt = target_ref[...]                                                   # (TB, 1) int32
    tgt_val = jnp.sum(jnp.where(col_ids == tgt, raw, jnp.zeros_like(raw)),
                      axis=-1, keepdims=True).astype(jnp.float32)           # (TB, 1)

    per_sample = row_max + jnp.log(sum_exp) - tgt_val                       # (TB, 1) NLL

    # Mask rows past the true batch (cdiv padding of the last tile reads garbage).
    row_ids = (jax.lax.broadcasted_iota(jnp.int32, (tb, 1), 0)
               + pl.program_id(0) * tile_rows)
    nll_ref[...] = jnp.where(row_ids < total_rows, per_sample, 0.0)


def _cross_entropy_xla(y_class_hat, y_class):
    # Fallback for tiny class counts (C < 128): the (TB, C) Pallas layout would pad
    # every vreg/DMA row to 128 lanes and waste >= (1 - C/128) of the bandwidth.
    logits = y_class_hat.astype(jnp.float32)
    lse = jax.nn.logsumexp(logits, axis=-1)
    tgt = jnp.take_along_axis(logits, y_class.astype(jnp.int32)[:, None], axis=-1)[:, 0]
    return jnp.mean(lse - tgt)


def cross_entropy_loss_pallas(y_class_hat, y_class):
    """y_class_hat: (batch, num_classes) float; y_class: (batch,) int.
    Returns scalar mean cross-entropy loss (float32)."""
    B, C = y_class_hat.shape

    if C < 128:
        return _cross_entropy_xla(y_class_hat, y_class)

    in_itemsize = jnp.dtype(y_class_hat.dtype).itemsize
    vmem_limit = _vmem_limit_bytes()

    # Byte-based tile sizing: double-buffered input block + one f32 (TB, C) temp
    # + (TB, 1) columns must fit in ~75% of the scoped VMEM limit.
    tile_budget = (vmem_limit * 3) // 4
    per_row_bytes = 2 * C * in_itemsize + C * 4 + 16
    tb_cap = max(8, (tile_budget // per_row_bytes) // 8 * 8)

    tb = min(tb_cap, _round_up(B, 8))
    if B >= 16:
        # Ensure >= 2 tiles so the "parallel" axis uses both v7x TensorCores.
        tb = min(tb, _round_up(_cdiv(B, 2), 8))
    tb = max(8, (tb // 8) * 8)
    num_tiles = _cdiv(B, tb)

    targets = y_class.astype(jnp.int32).reshape(B, 1)
    kernel = functools.partial(_ce_tile_kernel, total_rows=B, tile_rows=tb)

    nll = pl.pallas_call(
        kernel,
        out_shape=jax.ShapeDtypeStruct((num_tiles * tb, 1), jnp.float32),
        grid_spec=pltpu.PrefetchScalarGridSpec(
            num_scalar_prefetch=0,
            grid=(num_tiles,),
            in_specs=[
                pl.BlockSpec((tb, C), lambda i: (i, 0)),   # logits batch-tile
                pl.BlockSpec((tb, 1), lambda i: (i, 0)),   # target column tile
            ],
            out_specs=pl.BlockSpec((tb, 1), lambda i: (i, 0)),  # per-sample NLL tile
        ),
        compiler_params=pltpu.CompilerParams(
            dimension_semantics=("parallel",),             # batch tiles are independent
            vmem_limit_bytes=vmem_limit,
        ),
        cost_estimate=pl.CostEstimate(
            flops=6 * B * C,
            transcendentals=B * C,
            bytes_accessed=B * C * in_itemsize + B * 4 + num_tiles * tb * 4,
        ),
    )(y_class_hat, targets)

    # Tiny final reduction in plain JAX (fuses with surrounding ops); padded rows are 0.
    return jnp.sum(nll) / jnp.float32(B)


class LossClassCE:
    """JAX/Pallas equivalent of Loss_class_CE (nn.CrossEntropyLoss, mean reduction)."""

    def __init__(self, config=None):
        self.config = config or {}

    def __call__(self, y_class_hat, y_class):
        return {"loss_class": cross_entropy_loss_pallas(y_class_hat, y_class)}


if __name__ == "__main__":
    key = jax.random.PRNGKey(0)
    k_logits, k_targets = jax.random.split(key)

    # Small but lane-aligned shapes: C = 128 exercises the Pallas path, B = 16
    # produces two batch tiles (both grid steps + padding mask covered).
    batch, num_classes = 16, 128
    y_class_hat = jax.random.normal(k_logits, (batch, num_classes), dtype=jnp.float32)
    y_class = jax.random.randint(k_targets, (batch,), 0, num_classes, dtype=jnp.int32)

    loss_mod = LossClassCE(config={})
    out = loss_mod(y_class_hat, y_class)
    loss = jax.block_until_ready(out["loss_class"])

    # Reference check in plain JAX (same math as torch CrossEntropyLoss, mean reduction).
    ref = jnp.mean(
        jax.nn.logsumexp(y_class_hat, axis=-1)
        - jnp.take_along_axis(y_class_hat, y_class[:, None], axis=-1)[:, 0]
    )
    assert jnp.allclose(loss, ref, atol=1e-5, rtol=1e-5), (loss, ref)

    print("KERNEL_OK")
</pallas_src>

<mosaic_0001>
module attributes {stable_mosaic.version = 11 : i64} {
  func.func @_ce_tile_kernel(%arg0: i32, %arg1: memref<8x128xf32, #tpu.memory_space<vmem>>, %arg2: memref<8x1xi32, #tpu.memory_space<vmem>>, %arg3: memref<8x1xf32, #tpu.memory_space<vmem>>) attributes {dimension_semantics = [#tpu.dimension_semantics<parallel>], iteration_bounds = array<i64: 2>, scalar_prefetch = 0 : i64, scratch_operands = 0 : i64, tpu.core_type = #tpu.core_type<tc>, window_params = [{transform_indices = @transform_0, window_bounds = array<i64: 8, 128>}, {transform_indices = @transform_1, window_bounds = array<i64: 8, 1>}, {transform_indices = @transform_2, window_bounds = array<i64: 8, 1>}]} {
    %c0 = arith.constant 0 : index
    %c0_0 = arith.constant 0 : index
    %0 = vector.load %arg1[%c0, %c0_0] : memref<8x128xf32, #tpu.memory_space<vmem>>, vector<8x128xf32>
    %cst = arith.constant dense<0xFF800000> : vector<8xf32>
    %1 = vector.multi_reduction <maximumf>, %0, %cst [1] : vector<8x128xf32> to vector<8xf32>
    %2 = vector.shape_cast %1 : vector<8xf32> to vector<8x1xf32>
    %3 = vector.broadcast %2 : vector<8x1xf32> to vector<8x128xf32>
    %4 = arith.subf %0, %3 : vector<8x128xf32>
    %5 = math.exp %4 : vector<8x128xf32>
    %cst_1 = arith.constant dense<0.000000e+00> : vector<8xf32>
    %6 = vector.multi_reduction <add>, %5, %cst_1 [1] : vector<8x128xf32> to vector<8xf32>
    %7 = vector.shape_cast %6 : vector<8xf32> to vector<8x1xf32>
    %8 = tpu.iota {dimensions = array<i32: 1>} : vector<8x128xi32>
    %c0_2 = arith.constant 0 : index
    %c0_3 = arith.constant 0 : index
    %9 = vector.load %arg2[%c0_2, %c0_3] : memref<8x1xi32, #tpu.memory_space<vmem>>, vector<8x1xi32>
    %10 = vector.broadcast %9 : vector<8x1xi32> to vector<8x128xi32>
    %11 = arith.cmpi eq, %8, %10 : vector<8x128xi32>
    %cst_4 = arith.constant 0.000000e+00 : f32
    %12 = vector.broadcast %cst_4 : f32 to vector<8x128xf32>
    %13 = arith.select %11, %0, %12 : vector<8x128xi1>, vector<8x128xf32>
    %cst_5 = arith.constant dense<0.000000e+00> : vector<8xf32>
    %14 = vector.multi_reduction <add>, %13, %cst_5 [1] : vector<8x128xf32> to vector<8xf32>
    %15 = vector.shape_cast %14 : vector<8xf32> to vector<8x1xf32>
    %16 = math.log %7 : vector<8x1xf32>
    %17 = arith.addf %2, %16 : vector<8x1xf32>
    %18 = arith.subf %17, %15 : vector<8x1xf32>
    %19 = tpu.iota {dimensions = array<i32: 0>} : vector<8x1xi32>
    %c8_i32 = arith.constant 8 : i32
    %20 = arith.muli %arg0, %c8_i32 : i32
    %21 = vector.broadcast %20 : i32 to vector<8x1xi32>
    %22 = arith.addi %19, %21 : vector<8x1xi32>
    %c16_i32 = arith.constant 16 : i32
    %23 = vector.broadcast %c16_i32 : i32 to vector<8x1xi32>
    %24 = arith.cmpi slt, %22, %23 : vector<8x1xi32>
    %cst_6 = arith.constant 0.000000e+00 : f32
    %25 = vector.broadcast %cst_6 : f32 to vector<8x1xf32>
    %26 = arith.select %24, %18, %25 : vector<8x1xi1>, vector<8x1xf32>
    %c0_7 = arith.constant 0 : index
    %c0_8 = arith.constant 0 : index
    %27 = vector.load %arg3[%c0_7, %c0_8] : memref<8x1xf32, #tpu.memory_space<vmem>>, vector<8x1xf32>
    tpu.vector_store %arg3[%c0_7, %c0_8], %26 {strides = array<i32>} : memref<8x1xf32, #tpu.memory_space<vmem>>, vector<8x1xf32>,
    return
  }
  func.func @transform_0(%arg0: i32) -> (i32, i32) {
    %c0_i32 = arith.constant 0 : i32
    %c0_i32_0 = arith.constant 0 : i32
    return %arg0, %c0_i32 : i32, i32
  }
  func.func @transform_1(%arg0: i32) -> (i32, i32) {
    %c0_i32 = arith.constant 0 : i32
    %c0_i32_0 = arith.constant 0 : i32
    return %arg0, %c0_i32 : i32, i32
  }
  func.func @transform_2(%arg0: i32) -> (i32, i32) {
    %c0_i32 = arith.constant 0 : i32
    %c0_i32_0 = arith.constant 0 : i32
    return %arg0, %c0_i32 : i32, i32
  }
}

</mosaic_0001>

<bundles_post_ra>
// kernel: tpu_custom_call.1
= control target key start
LH: loop header
LB: loop body
LE: loop exit
PB: predicated region body
PF: predicated region fallthrough
CT: control target
= control target key end

     0   :  { %s301_s9 = smov 0   ;;  %s331_s0 = inlined_call_operand.vmem [shape: f32[16,128], index: 0, kind: input, shape index: {}]   ;;  %s332_s1 = inlined_call_operand.vmem [shape: s32[16,1], index: 1, kind: input, shape index: {}]   ;;  %s333_s2 = inlined_call_operand.vmem [shape: f32[16,1], index: 2, kind: output, shape index: {}]  }
   0x1 LB: > { %s307_s10 = sadd.s32 4294967295, %s283_s9   ;;  %p256_p0 = scmp.ge.s32.totalorder %s283_s9, 1  ;;  %s283_s9 = sphi %s301_s9, %s12_s9  }
   0x2   : > { %p120_p1 = scmp.lt.s32.totalorder %s283_s9, 3 }
   0x4   : > { %p121_p2 = pnand %p256_p0, %p120_p1 }
   0x5   : > { %p144_p3 = scmp.lt.s32.totalorder (!%p121_p2), %s307_s10, 1  ;;  %s260_s19 = sshll.u32 (!%p121_p2), %s307_s10, 3 }
   0x6   : > { %124 = sbr.rel (%p121_p2) target bundleno = 332 (0x14c), region = 28 }
   0xb   : > { %v285_v0 = vmov 0   ;;  %s145_s11 = scalar_select %p144_p3, %s307_s10, 1  ;;  %v164_v6 = vlaneseq  ;;  %v181_v13 = vstv %s260_s19  ;;  %vm185_vm2 = vcmask 7168  }
   0xc   : > { %272 = vset.pattern.permute.xlu0 %v285_v0 }
   0xd   : > { %s313_s12 = sshll.u32 %s145_s11, 3  ;;  %v165_v7 = vand.u32 127, %v164_v6  ;;  %v179_v12 = vshrl.u32 %v164_v6, 7 }
   0xe   : > { %s147_s15 = scalar_lea.vmem %s331_s0, %s313_s12  ;;  %s151_s18 = scalar_lea.vmem %s332_s1, %s313_s12 }
   0xf   : > { %v156_v1 = vld [vmem:[%s147_s15] sm:$0xff]  ;;  %v182_v15 = vadd.s32 %v181_v13, %v179_v12  ;;  %s155_s22 = scalar_lea.vmem %s333_s2, %s313_s12 }
  0x10   : > { %157 = vmax.xlane.f32.xlu0 %v156_v1  ;;  %v166_v2 = vld [vmem:[%s151_s18] sm:$0xff] }
  0x11   : > { %vm183_vm1 = vcmp.lt.s32.totalorder %v182_v15, 16 }
  0x26   : > { %168 = vperm.xlu0 %272, %v166_v2  }
  0x99   : > { %v158_v3 = vpop.xlane.xlu0 %157 }
  0x9a   : > { %v159_v4 = vsub.f32 %v156_v1, %v158_v3 }
  0x9c   : > { %v160_v5 = vmul.f32 1.442695, %v159_v4 }
  0x9e   : > { %273 = vpow2.f32 %v160_v5 }
  0xa1   : > { %v169_v8 = vpop.permute.xlu0 %168 }
  0xa2   : > { %vm170_vm0 = vcmp.eq.s32.totalorder %v165_v7, %v169_v8 }
  0xa3   : > { %v171_v10 = vsel %vm170_vm0, %v156_v1, 0.0 }
  0xab   : > { %v274_v9 = vpop.eup %273 }
  0xac   : > { %162 = vadd.xlane.f32.xlu1 %v274_v9 }
  0xb0   : > { %172 = vadd.xlane.f32.xlu1 %v171_v10 }
 0x135   : > { %v163_v11 = vpop.xlane.xlu1 %162 }
 0x136   : > { %275 = vlog2.f32 %v163_v11 }
 0x139   : > { %v173_v17 = vpop.xlane.xlu1 %172 }
 0x143   : > { %v276_v14 = vpop.eup %275 }
 0x144   : > { %v175_v16 = vmul.f32 0.6931472, %v276_v14 }
 0x146   : > { %v176_v18 = vadd.f32 %v175_v16, %v158_v3 }
 0x148   : > { %v177_v19 = vsub.f32 %v176_v18, %v173_v17 }
 0x14a   : > { %v184_v20 = vsel %vm183_vm1, %v177_v19, 0.0 }
 0x14b   : > { %186 = vst.msk [vmem:[%s155_s22] sm:$0xff] %vm185_vm2, %v184_v20 }
 0x14c PF: > { %s12_s9 = sadd.s32 1, %s283_s9  }
 0x14d   : > { %p9_p4 = scmp.ge.s32.totalorder %s12_s9, 4  }
 0x14f   :  { %11 = sbr.rel (!%p9_p4) target bundleno = 1 (0x1), region = 61 }

</bundles_post_ra>
